<compile_context>
chip_gen: v6e
topology: v6e:2x2x1
jax: 0.10.0
libtpu: 0.0.40
codegen_flags: <defaults>
</compile_context>

<pallas_src>
import functools

import jax
import jax.numpy as jnp
import numpy as np
from jax.experimental import pallas as pl
from jax.experimental.pallas import tpu as pltpu


def _round_up(v, m):
    return (v + m - 1) // m * m


def _vmem_limit_bytes():
    """~25% headroom below physical VMEM (v7x: ~48 MiB, v5e/v6e: ~96 MiB)."""
    try:
        return int(pltpu.get_tpu_info().vmem_capacity_bytes * 3 // 4)
    except Exception:
        return None  # fall back to the compiler default scoped-VMEM limit


def _gcn_kernel(s_ref, x_ref, w_ref, b_ref, o_ref, t_ref, *,
                cheb_k, n_batch, c_in, tile_n):
    """One grid step = one row tile of the output.

    s_ref : (N_pad, N_pad)        bf16  resident support
    x_ref : (N_pad, B*C)          bf16  resident, batch folded into lanes (b, c)
    w_ref : (cheb_k*C, O_pad)     bf16  resident fused weight (rows ordered (k, c))
    b_ref : (1, O_pad)            f32   resident bias
    o_ref : (B, TILE_N, O_pad)    output row tile
    t_ref : (cheb_k, N_pad, B*C)  bf16  VMEM scratch, persists across grid steps
    """
    # ---- Chebyshev recursion: run ONCE (grid step 0) on the batch-folded RHS.
    @pl.when(pl.program_id(0) == 0)
    def _():
        s = s_ref[...]
        x_bf = x_ref[...]                                   # (N_pad, B*C) bf16
        t_ref[0] = x_bf                                     # T_0 x = x (identity term)
        t_prev = x_bf.astype(jnp.float32)                   # f32 recursion carry
        t_cur = jnp.dot(s, x_bf, preferred_element_type=jnp.float32)
        t_ref[1] = t_cur.astype(jnp.bfloat16)
        for k in range(2, cheb_k):
            t_next = 2.0 * jnp.dot(s, t_cur.astype(jnp.bfloat16),
                                   preferred_element_type=jnp.float32) - t_prev
            t_ref[k] = t_next.astype(jnp.bfloat16)
            t_prev, t_cur = t_cur, t_next

    # ---- Every step: fused K = cheb_k*C output matmul for this row tile. ----
    r0 = pl.multiple_of(pl.program_id(0) * tile_n, tile_n)
    w = w_ref[...]                                          # (cheb_k*C, O_pad)
    bias = b_ref[...]                                       # (1, O_pad)
    for b in range(n_batch):
        # Gather this batch's channels of every Chebyshev term -> (TILE_N, cheb_k*C),
        # column order (k, c) matching the weight row order.
        slab = jnp.concatenate(
            [t_ref[k, pl.ds(r0, tile_n), b * c_in:(b + 1) * c_in]
             for k in range(cheb_k)],
            axis=-1)
        out_b = jnp.dot(slab, w, preferred_element_type=jnp.float32) + bias
        o_ref[b] = out_b.astype(o_ref.dtype)


def _pallas_gcn(s_pad, x_fold, w_pad, b2d, *, B, C, cheb_k, N_pad, tile_n,
                O_pad, out_dtype, single_buffer_resident):
    def resident(shape):
        zeros = (0,) * len(shape)
        index_map = lambda i, _z=zeros: _z                  # grid-invariant
        if single_buffer_resident:
            return pl.BlockSpec(shape, index_map, pipeline_mode=pl.Buffered(1))
        return pl.BlockSpec(shape, index_map)

    n_tiles = N_pad // tile_n
    kernel = functools.partial(_gcn_kernel, cheb_k=cheb_k, n_batch=B,
                               c_in=C, tile_n=tile_n)

    grid_spec = pltpu.PrefetchScalarGridSpec(
        num_scalar_prefetch=0,
        grid=(n_tiles,),
        in_specs=[
            resident((N_pad, N_pad)),            # S (resident)
            resident((N_pad, B * C)),            # x, batch folded into lanes
            resident((cheb_k * C, O_pad)),       # W fused over k (resident)
            resident((1, O_pad)),                # bias (resident)
        ],
        out_specs=pl.BlockSpec((B, tile_n, O_pad), lambda i: (0, i, 0)),
        scratch_shapes=[pltpu.VMEM((cheb_k, N_pad, B * C), jnp.bfloat16)],
    )

    return pl.pallas_call(
        kernel,
        out_shape=jax.ShapeDtypeStruct((B, N_pad, O_pad), out_dtype),
        grid_spec=grid_spec,
        compiler_params=pltpu.CompilerParams(
            # Row tiles consume the scratch written at step 0 -> sequential axis.
            dimension_semantics=("arbitrary",),
            vmem_limit_bytes=_vmem_limit_bytes(),
        ),
    )(s_pad, x_fold, w_pad, b2d)


def gcn_forward(x, support, weights, bias, cheb_k, *, tile_n=512):
    """x: (B, N, C_in), support: (N, N), weights: (cheb_k*C_in, O), bias: (O,)."""
    B, N, C = x.shape
    O = weights.shape[1]
    # cheb_k == 1 is ill-defined in the original torch module as well (it still
    # concatenates the identity and S terms); keep the guard.
    assert weights.shape[0] == cheb_k * C and cheb_k >= 2

    # Lane-dense output (unmasked vst): pad dim_out up to a multiple of 128.
    O_pad = _round_up(max(O, 128), 128)
    # Row tiling of N (bounds the acc live-set / output writeback per step).
    tile_n = min(tile_n, _round_up(N, 8))
    N_pad = _round_up(N, tile_n)

    # Fold batch into the matmul RHS: (B, N, C) -> (N, B*C); cast bf16 once here.
    x_fold = jnp.transpose(x, (1, 0, 2)).reshape(N, B * C)
    x_fold = jnp.pad(x_fold, ((0, N_pad - N), (0, 0))).astype(jnp.bfloat16)
    s_pad = jnp.pad(support, ((0, N_pad - N), (0, N_pad - N))).astype(jnp.bfloat16)
    w_pad = jnp.pad(weights, ((0, 0), (0, O_pad - O))).astype(jnp.bfloat16)
    b2d = jnp.pad(bias, (0, O_pad - O)).reshape(1, O_pad).astype(jnp.float32)

    kwargs = dict(B=B, C=C, cheb_k=cheb_k, N_pad=N_pad, tile_n=tile_n,
                  O_pad=O_pad, out_dtype=x.dtype)
    try:
        out = _pallas_gcn(s_pad, x_fold, w_pad, b2d,
                          single_buffer_resident=True, **kwargs)
    except Exception:
        # pipeline_mode=pl.Buffered(1) not supported on this JAX/Mosaic version:
        # fall back to default (double) buffering of the resident inputs.
        out = _pallas_gcn(s_pad, x_fold, w_pad, b2d,
                          single_buffer_resident=False, **kwargs)

    return out[:, :N, :O]


def gcn_reference(x, support, weights, bias, cheb_k):
    N = support.shape[0]
    supports = [jnp.eye(N, dtype=support.dtype), support]
    for _ in range(2, cheb_k):
        supports.append(2.0 * support @ supports[-1] - supports[-2])
    x_g = jnp.concatenate(
        [jnp.einsum('nm,bmc->bnc', s, x) for s in supports], axis=-1)
    return jnp.einsum('bni,io->bno', x_g, weights) + bias


if __name__ == "__main__":
    # Small, deterministic example shapes.
    B, N, C_in, O, cheb_k = 2, 16, 4, 32, 3

    key = jax.random.PRNGKey(0)
    kx, ks, kw = jax.random.split(key, 3)

    x = jax.random.normal(kx, (B, N, C_in), dtype=jnp.float32)
    support = jax.random.normal(ks, (N, N), dtype=jnp.float32) * 0.1

    # xavier_normal_ init: std = sqrt(2 / (fan_in + fan_out))
    fan_in, fan_out = cheb_k * C_in, O
    std = float(np.sqrt(2.0 / (fan_in + fan_out)))
    weights = jax.random.normal(kw, (cheb_k * C_in, O), dtype=jnp.float32) * std
    bias = jnp.zeros((O,), dtype=jnp.float32)

    out = gcn_forward(x, support, weights, bias, cheb_k)
    out = jax.block_until_ready(out)

    ref = gcn_reference(x, support, weights, bias, cheb_k)
    # bf16 MXU inputs (f32 accumulation / f32 recursion carry) vs pure f32
    # reference -> loosened tolerance; error grows with cheb_k and sqrt(N).
    np.testing.assert_allclose(np.asarray(out), np.asarray(ref),
                               rtol=2e-2, atol=3e-2)
    print("KERNEL_OK")
</pallas_src>

<mosaic_0001>
module attributes {stable_mosaic.version = 11 : i64} {
  func.func @_gcn_kernel(%arg0: i32, %arg1: memref<16x16xbf16, #tpu.memory_space<vmem>>, %arg2: memref<16x8xbf16, #tpu.memory_space<vmem>>, %arg3: memref<12x128xbf16, #tpu.memory_space<vmem>>, %arg4: memref<1x128xf32, #tpu.memory_space<vmem>>, %arg5: memref<2x16x128xf32, #tpu.memory_space<vmem>>, %arg6: memref<3x16x8xbf16, #tpu.memory_space<vmem>>) attributes {dimension_semantics = [#tpu.dimension_semantics<arbitrary>], iteration_bounds = array<i64: 1>, scalar_prefetch = 0 : i64, scratch_operands = 1 : i64, tpu.core_type = #tpu.core_type<tc>, window_params = [{pipeline_mode = #tpu.pipeline_mode<synchronous>, transform_indices = @transform_0, window_bounds = array<i64: 16, 16>}, {pipeline_mode = #tpu.pipeline_mode<synchronous>, transform_indices = @transform_1, window_bounds = array<i64: 16, 8>}, {pipeline_mode = #tpu.pipeline_mode<synchronous>, transform_indices = @transform_2, window_bounds = array<i64: 12, 128>}, {pipeline_mode = #tpu.pipeline_mode<synchronous>, transform_indices = @transform_3, window_bounds = array<i64: 1, 128>}, {transform_indices = @transform_4, window_bounds = array<i64: 2, 16, 128>}]} {
    %c0_i32 = arith.constant 0 : i32
    %0 = arith.cmpi eq, %arg0, %c0_i32 : i32
    %1 = arith.extui %0 : i1 to i32
    %c0_i32_0 = arith.constant 0 : i32
    %2 = arith.cmpi ne, %1, %c0_i32_0 : i32
    scf.if %2 {
      %c0_20 = arith.constant 0 : index
      %c0_21 = arith.constant 0 : index
      %39 = vector.load %arg1[%c0_20, %c0_21] : memref<16x16xbf16, #tpu.memory_space<vmem>>, vector<16x16xbf16>
      %c0_22 = arith.constant 0 : index
      %c0_23 = arith.constant 0 : index
      %40 = vector.load %arg2[%c0_22, %c0_23] : memref<16x8xbf16, #tpu.memory_space<vmem>>, vector<16x8xbf16>
      %c0_24 = arith.constant 0 : index
      %c0_25 = arith.constant 0 : index
      %c0_26 = arith.constant 0 : index
      %41 = vector.load %arg6[%c0_24, %c0_25, %c0_26] : memref<3x16x8xbf16, #tpu.memory_space<vmem>>, vector<1x16x8xbf16>
      %42 = vector.shape_cast %41 : vector<1x16x8xbf16> to vector<16x8xbf16>
      %43 = vector.shape_cast %40 : vector<16x8xbf16> to vector<1x16x8xbf16>
      tpu.vector_store %arg6[%c0_24, %c0_25, %c0_26], %43 {strides = array<i32>} : memref<3x16x8xbf16, #tpu.memory_space<vmem>>, vector<1x16x8xbf16>,
      %44 = arith.extf %40 : vector<16x8xbf16> to vector<16x8xf32>
      %cst_27 = arith.constant dense<0.000000e+00> : vector<16x8xf32>
      %45 = tpu.matmul %39, %40, %cst_27 {dimension_numbers = #tpu.dot_dimension_numbers<[1], [0], [0], [1], [0, 0, 1, 1], [], []>} : vector<16x16xbf16>, vector<16x8xbf16>, vector<16x8xf32> -> vector<16x8xf32>
      %46 = arith.truncf %45 : vector<16x8xf32> to vector<16x8xbf16>
      %c1_28 = arith.constant 1 : index
      %c0_29 = arith.constant 0 : index
      %c0_30 = arith.constant 0 : index
      %47 = vector.load %arg6[%c1_28, %c0_29, %c0_30] : memref<3x16x8xbf16, #tpu.memory_space<vmem>>, vector<1x16x8xbf16>
      %48 = vector.shape_cast %47 : vector<1x16x8xbf16> to vector<16x8xbf16>
      %49 = vector.shape_cast %46 : vector<16x8xbf16> to vector<1x16x8xbf16>
      tpu.vector_store %arg6[%c1_28, %c0_29, %c0_30], %49 {strides = array<i32>} : memref<3x16x8xbf16, #tpu.memory_space<vmem>>, vector<1x16x8xbf16>,
      %50 = arith.truncf %45 : vector<16x8xf32> to vector<16x8xbf16>
      %cst_31 = arith.constant dense<0.000000e+00> : vector<16x8xf32>
      %51 = tpu.matmul %39, %50, %cst_31 {dimension_numbers = #tpu.dot_dimension_numbers<[1], [0], [0], [1], [0, 0, 1, 1], [], []>} : vector<16x16xbf16>, vector<16x8xbf16>, vector<16x8xf32> -> vector<16x8xf32>
      %cst_32 = arith.constant 2.000000e+00 : f32
      %52 = vector.broadcast %cst_32 : f32 to vector<16x8xf32>
      %53 = arith.mulf %52, %51 : vector<16x8xf32>
      %54 = arith.subf %53, %44 : vector<16x8xf32>
      %55 = arith.truncf %54 : vector<16x8xf32> to vector<16x8xbf16>
      %c2_33 = arith.constant 2 : index
      %c0_34 = arith.constant 0 : index
      %c0_35 = arith.constant 0 : index
      %56 = vector.load %arg6[%c2_33, %c0_34, %c0_35] : memref<3x16x8xbf16, #tpu.memory_space<vmem>>, vector<1x16x8xbf16>
      %57 = vector.shape_cast %56 : vector<1x16x8xbf16> to vector<16x8xbf16>
      %58 = vector.shape_cast %55 : vector<16x8xbf16> to vector<1x16x8xbf16>
      tpu.vector_store %arg6[%c2_33, %c0_34, %c0_35], %58 {strides = array<i32>} : memref<3x16x8xbf16, #tpu.memory_space<vmem>>, vector<1x16x8xbf16>,
    } else {
    }
    %c16_i32 = arith.constant 16 : i32
    %3 = arith.muli %arg0, %c16_i32 : i32
    %4 = tpu.assume_multiple %3, 16 : i32
    %c0 = arith.constant 0 : index
    %c0_1 = arith.constant 0 : index
    %5 = vector.load %arg3[%c0, %c0_1] : memref<12x128xbf16, #tpu.memory_space<vmem>>, vector<12x128xbf16>
    %c0_2 = arith.constant 0 : index
    %c0_3 = arith.constant 0 : index
    %6 = vector.load %arg4[%c0_2, %c0_3] : memref<1x128xf32, #tpu.memory_space<vmem>>, vector<1x128xf32>
    %c0_4 = arith.constant 0 : index
    %7 = arith.index_cast %4 : i32 to index
    %c0_5 = arith.constant 0 : index
    %8 = vector.load %arg6[%c0_4, %7, %c0_5] : memref<3x16x8xbf16, #tpu.memory_space<vmem>>, vector<1x16x4xbf16>
    %9 = vector.shape_cast %8 : vector<1x16x4xbf16> to vector<16x4xbf16>
    %c1 = arith.constant 1 : index
    %10 = arith.index_cast %4 : i32 to index
    %c0_6 = arith.constant 0 : index
    %11 = vector.load %arg6[%c1, %10, %c0_6] : memref<3x16x8xbf16, #tpu.memory_space<vmem>>, vector<1x16x4xbf16>
    %12 = vector.shape_cast %11 : vector<1x16x4xbf16> to vector<16x4xbf16>
    %c2 = arith.constant 2 : index
    %13 = arith.index_cast %4 : i32 to index
    %c0_7 = arith.constant 0 : index
    %14 = vector.load %arg6[%c2, %13, %c0_7] : memref<3x16x8xbf16, #tpu.memory_space<vmem>>, vector<1x16x4xbf16>
    %15 = vector.shape_cast %14 : vector<1x16x4xbf16> to vector<16x4xbf16>
    %16 = tpu.concatenate %9, %12, %15 in 1 : vector<16x4xbf16>, vector<16x4xbf16>, vector<16x4xbf16> -> vector<16x12xbf16>
    %cst = arith.constant dense<0.000000e+00> : vector<16x128xf32>
    %17 = tpu.matmul %16, %5, %cst {dimension_numbers = #tpu.dot_dimension_numbers<[1], [0], [0], [1], [0, 0, 1, 1], [], []>} : vector<16x12xbf16>, vector<12x128xbf16>, vector<16x128xf32> -> vector<16x128xf32>
    %18 = vector.broadcast %6 : vector<1x128xf32> to vector<16x128xf32>
    %19 = arith.addf %17, %18 : vector<16x128xf32>
    %c0_8 = arith.constant 0 : index
    %c0_9 = arith.constant 0 : index
    %c0_10 = arith.constant 0 : index
    %20 = vector.load %arg5[%c0_8, %c0_9, %c0_10] : memref<2x16x128xf32, #tpu.memory_space<vmem>>, vector<1x16x128xf32>
    %21 = vector.shape_cast %20 : vector<1x16x128xf32> to vector<16x128xf32>
    %22 = vector.shape_cast %19 : vector<16x128xf32> to vector<1x16x128xf32>
    tpu.vector_store %arg5[%c0_8, %c0_9, %c0_10], %22 {strides = array<i32>} : memref<2x16x128xf32, #tpu.memory_space<vmem>>, vector<1x16x128xf32>,
    %c0_11 = arith.constant 0 : index
    %23 = arith.index_cast %4 : i32 to index
    %c4 = arith.constant 4 : index
    %24 = vector.load %arg6[%c0_11, %23, %c4] : memref<3x16x8xbf16, #tpu.memory_space<vmem>>, vector<1x16x4xbf16>
    %25 = vector.shape_cast %24 : vector<1x16x4xbf16> to vector<16x4xbf16>
    %c1_12 = arith.constant 1 : index
    %26 = arith.index_cast %4 : i32 to index
    %c4_13 = arith.constant 4 : index
    %27 = vector.load %arg6[%c1_12, %26, %c4_13] : memref<3x16x8xbf16, #tpu.memory_space<vmem>>, vector<1x16x4xbf16>
    %28 = vector.shape_cast %27 : vector<1x16x4xbf16> to vector<16x4xbf16>
    %c2_14 = arith.constant 2 : index
    %29 = arith.index_cast %4 : i32 to index
    %c4_15 = arith.constant 4 : index
    %30 = vector.load %arg6[%c2_14, %29, %c4_15] : memref<3x16x8xbf16, #tpu.memory_space<vmem>>, vector<1x16x4xbf16>
    %31 = vector.shape_cast %30 : vector<1x16x4xbf16> to vector<16x4xbf16>
    %32 = tpu.concatenate %25, %28, %31 in 1 : vector<16x4xbf16>, vector<16x4xbf16>, vector<16x4xbf16> -> vector<16x12xbf16>
    %cst_16 = arith.constant dense<0.000000e+00> : vector<16x128xf32>
    %33 = tpu.matmul %32, %5, %cst_16 {dimension_numbers = #tpu.dot_dimension_numbers<[1], [0], [0], [1], [0, 0, 1, 1], [], []>} : vector<16x12xbf16>, vector<12x128xbf16>, vector<16x128xf32> -> vector<16x128xf32>
    %34 = vector.broadcast %6 : vector<1x128xf32> to vector<16x128xf32>
    %35 = arith.addf %33, %34 : vector<16x128xf32>
    %c1_17 = arith.constant 1 : index
    %c0_18 = arith.constant 0 : index
    %c0_19 = arith.constant 0 : index
    %36 = vector.load %arg5[%c1_17, %c0_18, %c0_19] : memref<2x16x128xf32, #tpu.memory_space<vmem>>, vector<1x16x128xf32>
    %37 = vector.shape_cast %36 : vector<1x16x128xf32> to vector<16x128xf32>
    %38 = vector.shape_cast %35 : vector<16x128xf32> to vector<1x16x128xf32>
    tpu.vector_store %arg5[%c1_17, %c0_18, %c0_19], %38 {strides = array<i32>} : memref<2x16x128xf32, #tpu.memory_space<vmem>>, vector<1x16x128xf32>,
    return
  }
  func.func @transform_0(%arg0: i32) -> (i32, i32) {
    %c0_i32 = arith.constant 0 : i32
    %c0_i32_0 = arith.constant 0 : i32
    %c0_i32_1 = arith.constant 0 : i32
    return %c0_i32, %c0_i32_0 : i32, i32
  }
  func.func @transform_1(%arg0: i32) -> (i32, i32) {
    %c0_i32 = arith.constant 0 : i32
    %c0_i32_0 = arith.constant 0 : i32
    %c0_i32_1 = arith.constant 0 : i32
    return %c0_i32, %c0_i32_0 : i32, i32
  }
  func.func @transform_2(%arg0: i32) -> (i32, i32) {
    %c0_i32 = arith.constant 0 : i32
    %c0_i32_0 = arith.constant 0 : i32
    %c0_i32_1 = arith.constant 0 : i32
    return %c0_i32, %c0_i32_0 : i32, i32
  }
  func.func @transform_3(%arg0: i32) -> (i32, i32) {
    %c0_i32 = arith.constant 0 : i32
    %c0_i32_0 = arith.constant 0 : i32
    %c0_i32_1 = arith.constant 0 : i32
    return %c0_i32, %c0_i32_0 : i32, i32
  }
  func.func @transform_4(%arg0: i32) -> (i32, i32, i32) {
    %c0_i32 = arith.constant 0 : i32
    %c0_i32_0 = arith.constant 0 : i32
    %c0_i32_1 = arith.constant 0 : i32
    return %c0_i32, %arg0, %c0_i32_0 : i32, i32, i32
  }
}

module attributes {stable_mosaic.version = 11 : i64} {
  func.func @_gcn_kernel(%arg0: i32, %arg1: memref<16x16xbf16, #tpu.memory_space<vmem>>, %arg2: memref<16x8xbf16, #tpu.memory_space<vmem>>, %arg3: memref<12x128xbf16, #tpu.memory_space<vmem>>, %arg4: memref<1x128xf32, #tpu.memory_space<vmem>>, %arg5: memref<2x16x128xf32, #tpu.memory_space<vmem>>, %arg6: memref<3x16x8xbf16, #tpu.memory_space<vmem>>) attributes {dimension_semantics = [#tpu.dimension_semantics<arbitrary>], iteration_bounds = array<i64: 1>, scalar_prefetch = 0 : i64, scratch_operands = 1 : i64, tpu.core_type = #tpu.core_type<tc>, window_params = [{pipeline_mode = #tpu.pipeline_mode<synchronous>, transform_indices = @transform_0, window_bounds = array<i64: 16, 16>}, {pipeline_mode = #tpu.pipeline_mode<synchronous>, transform_indices = @transform_1, window_bounds = array<i64: 16, 8>}, {pipeline_mode = #tpu.pipeline_mode<synchronous>, transform_indices = @transform_2, window_bounds = array<i64: 12, 128>}, {pipeline_mode = #tpu.pipeline_mode<synchronous>, transform_indices = @transform_3, window_bounds = array<i64: 1, 128>}, {transform_indices = @transform_4, window_bounds = array<i64: 2, 16, 128>}]} {
    %c0_i32 = arith.constant 0 : i32
    %0 = arith.cmpi eq, %arg0, %c0_i32 : i32
    %1 = arith.extui %0 : i1 to i32
    %c0_i32_0 = arith.constant 0 : i32
    %2 = arith.cmpi ne, %1, %c0_i32_0 : i32
    scf.if %2 {
      %c0_20 = arith.constant 0 : index
      %c0_21 = arith.constant 0 : index
      %39 = vector.load %arg1[%c0_20, %c0_21] : memref<16x16xbf16, #tpu.memory_space<vmem>>, vector<16x16xbf16>
      %c0_22 = arith.constant 0 : index
      %c0_23 = arith.constant 0 : index
      %40 = vector.load %arg2[%c0_22, %c0_23] : memref<16x8xbf16, #tpu.memory_space<vmem>>, vector<16x8xbf16>
      %c0_24 = arith.constant 0 : index
      %c0_25 = arith.constant 0 : index
      %c0_26 = arith.constant 0 : index
      %41 = vector.load %arg6[%c0_24, %c0_25, %c0_26] : memref<3x16x8xbf16, #tpu.memory_space<vmem>>, vector<1x16x8xbf16>
      %42 = vector.shape_cast %41 : vector<1x16x8xbf16> to vector<16x8xbf16>
      %43 = vector.shape_cast %40 : vector<16x8xbf16> to vector<1x16x8xbf16>
      tpu.vector_store %arg6[%c0_24, %c0_25, %c0_26], %43 {strides = array<i32>} : memref<3x16x8xbf16, #tpu.memory_space<vmem>>, vector<1x16x8xbf16>,
      %44 = arith.extf %40 : vector<16x8xbf16> to vector<16x8xf32>
      %cst_27 = arith.constant dense<0.000000e+00> : vector<16x8xf32>
      %45 = tpu.matmul %39, %40, %cst_27 {dimension_numbers = #tpu.dot_dimension_numbers<[1], [0], [0], [1], [0, 0, 1, 1], [], []>} : vector<16x16xbf16>, vector<16x8xbf16>, vector<16x8xf32> -> vector<16x8xf32>
      %46 = arith.truncf %45 : vector<16x8xf32> to vector<16x8xbf16>
      %c1_28 = arith.constant 1 : index
      %c0_29 = arith.constant 0 : index
      %c0_30 = arith.constant 0 : index
      %47 = vector.load %arg6[%c1_28, %c0_29, %c0_30] : memref<3x16x8xbf16, #tpu.memory_space<vmem>>, vector<1x16x8xbf16>
      %48 = vector.shape_cast %47 : vector<1x16x8xbf16> to vector<16x8xbf16>
      %49 = vector.shape_cast %46 : vector<16x8xbf16> to vector<1x16x8xbf16>
      tpu.vector_store %arg6[%c1_28, %c0_29, %c0_30], %49 {strides = array<i32>} : memref<3x16x8xbf16, #tpu.memory_space<vmem>>, vector<1x16x8xbf16>,
      %50 = arith.truncf %45 : vector<16x8xf32> to vector<16x8xbf16>
      %cst_31 = arith.constant dense<0.000000e+00> : vector<16x8xf32>
      %51 = tpu.matmul %39, %50, %cst_31 {dimension_numbers = #tpu.dot_dimension_numbers<[1], [0], [0], [1], [0, 0, 1, 1], [], []>} : vector<16x16xbf16>, vector<16x8xbf16>, vector<16x8xf32> -> vector<16x8xf32>
      %cst_32 = arith.constant 2.000000e+00 : f32
      %52 = vector.broadcast %cst_32 : f32 to vector<16x8xf32>
      %53 = arith.mulf %52, %51 : vector<16x8xf32>
      %54 = arith.subf %53, %44 : vector<16x8xf32>
      %55 = arith.truncf %54 : vector<16x8xf32> to vector<16x8xbf16>
      %c2_33 = arith.constant 2 : index
      %c0_34 = arith.constant 0 : index
      %c0_35 = arith.constant 0 : index
      %56 = vector.load %arg6[%c2_33, %c0_34, %c0_35] : memref<3x16x8xbf16, #tpu.memory_space<vmem>>, vector<1x16x8xbf16>
      %57 = vector.shape_cast %56 : vector<1x16x8xbf16> to vector<16x8xbf16>
      %58 = vector.shape_cast %55 : vector<16x8xbf16> to vector<1x16x8xbf16>
      tpu.vector_store %arg6[%c2_33, %c0_34, %c0_35], %58 {strides = array<i32>} : memref<3x16x8xbf16, #tpu.memory_space<vmem>>, vector<1x16x8xbf16>,
    } else {
    }
    %c16_i32 = arith.constant 16 : i32
    %3 = arith.muli %arg0, %c16_i32 : i32
    %4 = tpu.assume_multiple %3, 16 : i32
    %c0 = arith.constant 0 : index
    %c0_1 = arith.constant 0 : index
    %5 = vector.load %arg3[%c0, %c0_1] : memref<12x128xbf16, #tpu.memory_space<vmem>>, vector<12x128xbf16>
    %c0_2 = arith.constant 0 : index
    %c0_3 = arith.constant 0 : index
    %6 = vector.load %arg4[%c0_2, %c0_3] : memref<1x128xf32, #tpu.memory_space<vmem>>, vector<1x128xf32>
    %c0_4 = arith.constant 0 : index
    %7 = arith.index_cast %4 : i32 to index
    %c0_5 = arith.constant 0 : index
    %8 = vector.load %arg6[%c0_4, %7, %c0_5] : memref<3x16x8xbf16, #tpu.memory_space<vmem>>, vector<1x16x4xbf16>
    %9 = vector.shape_cast %8 : vector<1x16x4xbf16> to vector<16x4xbf16>
    %c1 = arith.constant 1 : index
    %10 = arith.index_cast %4 : i32 to index
    %c0_6 = arith.constant 0 : index
    %11 = vector.load %arg6[%c1, %10, %c0_6] : memref<3x16x8xbf16, #tpu.memory_space<vmem>>, vector<1x16x4xbf16>
    %12 = vector.shape_cast %11 : vector<1x16x4xbf16> to vector<16x4xbf16>
    %c2 = arith.constant 2 : index
    %13 = arith.index_cast %4 : i32 to index
    %c0_7 = arith.constant 0 : index
    %14 = vector.load %arg6[%c2, %13, %c0_7] : memref<3x16x8xbf16, #tpu.memory_space<vmem>>, vector<1x16x4xbf16>
    %15 = vector.shape_cast %14 : vector<1x16x4xbf16> to vector<16x4xbf16>
    %16 = tpu.concatenate %9, %12, %15 in 1 : vector<16x4xbf16>, vector<16x4xbf16>, vector<16x4xbf16> -> vector<16x12xbf16>
    %cst = arith.constant dense<0.000000e+00> : vector<16x128xf32>
    %17 = tpu.matmul %16, %5, %cst {dimension_numbers = #tpu.dot_dimension_numbers<[1], [0], [0], [1], [0, 0, 1, 1], [], []>} : vector<16x12xbf16>, vector<12x128xbf16>, vector<16x128xf32> -> vector<16x128xf32>
    %18 = vector.broadcast %6 : vector<1x128xf32> to vector<16x128xf32>
    %19 = arith.addf %17, %18 : vector<16x128xf32>
    %c0_8 = arith.constant 0 : index
    %c0_9 = arith.constant 0 : index
    %c0_10 = arith.constant 0 : index
    %20 = vector.load %arg5[%c0_8, %c0_9, %c0_10] : memref<2x16x128xf32, #tpu.memory_space<vmem>>, vector<1x16x128xf32>
    %21 = vector.shape_cast %20 : vector<1x16x128xf32> to vector<16x128xf32>
    %22 = vector.shape_cast %19 : vector<16x128xf32> to vector<1x16x128xf32>
    tpu.vector_store %arg5[%c0_8, %c0_9, %c0_10], %22 {strides = array<i32>} : memref<2x16x128xf32, #tpu.memory_space<vmem>>, vector<1x16x128xf32>,
    %c0_11 = arith.constant 0 : index
    %23 = arith.index_cast %4 : i32 to index
    %c4 = arith.constant 4 : index
    %24 = vector.load %arg6[%c0_11, %23, %c4] : memref<3x16x8xbf16, #tpu.memory_space<vmem>>, vector<1x16x4xbf16>
    %25 = vector.shape_cast %24 : vector<1x16x4xbf16> to vector<16x4xbf16>
    %c1_12 = arith.constant 1 : index
    %26 = arith.index_cast %4 : i32 to index
    %c4_13 = arith.constant 4 : index
    %27 = vector.load %arg6[%c1_12, %26, %c4_13] : memref<3x16x8xbf16, #tpu.memory_space<vmem>>, vector<1x16x4xbf16>
    %28 = vector.shape_cast %27 : vector<1x16x4xbf16> to vector<16x4xbf16>
    %c2_14 = arith.constant 2 : index
    %29 = arith.index_cast %4 : i32 to index
    %c4_15 = arith.constant 4 : index
    %30 = vector.load %arg6[%c2_14, %29, %c4_15] : memref<3x16x8xbf16, #tpu.memory_space<vmem>>, vector<1x16x4xbf16>
    %31 = vector.shape_cast %30 : vector<1x16x4xbf16> to vector<16x4xbf16>
    %32 = tpu.concatenate %25, %28, %31 in 1 : vector<16x4xbf16>, vector<16x4xbf16>, vector<16x4xbf16> -> vector<16x12xbf16>
    %cst_16 = arith.constant dense<0.000000e+00> : vector<16x128xf32>
    %33 = tpu.matmul %32, %5, %cst_16 {dimension_numbers = #tpu.dot_dimension_numbers<[1], [0], [0], [1], [0, 0, 1, 1], [], []>} : vector<16x12xbf16>, vector<12x128xbf16>, vector<16x128xf32> -> vector<16x128xf32>
    %34 = vector.broadcast %6 : vector<1x128xf32> to vector<16x128xf32>
    %35 = arith.addf %33, %34 : vector<16x128xf32>
    %c1_17 = arith.constant 1 : index
    %c0_18 = arith.constant 0 : index
    %c0_19 = arith.constant 0 : index
    %36 = vector.load %arg5[%c1_17, %c0_18, %c0_19] : memref<2x16x128xf32, #tpu.memory_space<vmem>>, vector<1x16x128xf32>
    %37 = vector.shape_cast %36 : vector<1x16x128xf32> to vector<16x128xf32>
    %38 = vector.shape_cast %35 : vector<16x128xf32> to vector<1x16x128xf32>
    tpu.vector_store %arg5[%c1_17, %c0_18, %c0_19], %38 {strides = array<i32>} : memref<2x16x128xf32, #tpu.memory_space<vmem>>, vector<1x16x128xf32>,
    return
  }
  func.func @transform_0(%arg0: i32) -> (i32, i32) {
    %c0_i32 = arith.constant 0 : i32
    %c0_i32_0 = arith.constant 0 : i32
    %c0_i32_1 = arith.constant 0 : i32
    return %c0_i32, %c0_i32_0 : i32, i32
  }
  func.func @transform_1(%arg0: i32) -> (i32, i32) {
    %c0_i32 = arith.constant 0 : i32
    %c0_i32_0 = arith.constant 0 : i32
    %c0_i32_1 = arith.constant 0 : i32
    return %c0_i32, %c0_i32_0 : i32, i32
  }
  func.func @transform_2(%arg0: i32) -> (i32, i32) {
    %c0_i32 = arith.constant 0 : i32
    %c0_i32_0 = arith.constant 0 : i32
    %c0_i32_1 = arith.constant 0 : i32
    return %c0_i32, %c0_i32_0 : i32, i32
  }
  func.func @transform_3(%arg0: i32) -> (i32, i32) {
    %c0_i32 = arith.constant 0 : i32
    %c0_i32_0 = arith.constant 0 : i32
    %c0_i32_1 = arith.constant 0 : i32
    return %c0_i32, %c0_i32_0 : i32, i32
  }
  func.func @transform_4(%arg0: i32) -> (i32, i32, i32) {
    %c0_i32 = arith.constant 0 : i32
    %c0_i32_0 = arith.constant 0 : i32
    %c0_i32_1 = arith.constant 0 : i32
    return %c0_i32, %arg0, %c0_i32_0 : i32, i32, i32
  }
}

</mosaic_0001>

<bundles_post_ra>
// kernel: tpu_custom_call.1
= control target key start
LH: loop header
LB: loop body
LE: loop exit
PB: predicated region body
PF: predicated region fallthrough
CT: control target
= control target key end

     0   :  { %9 = vsyncpa [#allocation4], 0  ;;  %s559_s0 = inlined_call_operand.vmem [shape: bf16[16,16], index: 0, kind: input, shape index: {}]   ;;  %s560_s1 = inlined_call_operand.vmem [shape: bf16[16,8], index: 1, kind: input, shape index: {}]   ;;  %s561_s2 = inlined_call_operand.hbm [shape: bf16[12,128], index: 2, kind: input, shape index: {}]   ;;  %s562_s3 = inlined_call_operand.vmem [shape: f32[1,128], index: 3, kind: input, shape index: {}]   ;;  %s563_s4 = inlined_call_operand.hbm [shape: f32[2,16,128], index: 4, kind: output, shape index: {}]  }
   0x1   :  { %10 = vsyncpa [#allocation5], 0  ;;  %s492_s15 = smov [#allocation3]  }
   0x2   :  { %s20_s16 = sshll.u32 %s492_s15, 4  ;;  %s21_s16 = int_to_ptr.vmem [resolvable:$true] %s20_s16 }
   0x3   :  { %s456_s17 = scalar_lea.vmem %s21_s16, 128  ;;  %p461_p1 = scmp.lt.s32.totalorder %s21_s16, %s21_s16 }
   0x4   :  { %p457_p0 = scmp.ne.s32.totalorder %s21_s16, %s456_s17  ;;  %p462_p2 = scmp.lt.s32.totalorder %s456_s17, %s456_s17 }
   0x6   :  { %p463_p3 = por %p462_p2, %p461_p1 }
   0x8   :  { %p464_p4 = pnand %p463_p3, %p457_p0 }
   0xa   :  { %467 = shalt.err (!%p464_p4)
}
   0xb   :  { %s493_s18 = smov 64   ;;  %s494_s19 = smov 4  }
   0xc   :  { %26 = dma.hbm_to_vmem [thread:$0]  %s561_s2, 128, %s21_s16, [#allocation4], %s493_s18, %s493_s18, %s494_s19  }
   0xd   :  { %488 = dma.done.wait [#allocation4], 128  }
   0xe   :  { %489 = vsyncadd [#allocation4], 4294967168  ;;  %v495_v0 = vmov 0.0   ;;  %vm496_vm0 = vmmov 0   ;;  %vm41_vm1 = vcmask 60416   ;;  %v440_v4 = vld [vmem:[%s559_s0] sm:$0xff]  }
   0xf   :  { %407 = vmatprep.subr.bf16.mxu0 %v495_v0  ;;  %409 = vmatprep.mubr.msk.bf16.mxu0 %vm496_vm0, %v495_v0  ;;  %v39_v1 = vld [vmem:[%s560_s1] sm:$0xf]  ;;  %v40_v2 = vld [vmem:[%s560_s1 + $0x4] sm:$0xf]  ;;  %vm57_vm2 = vcmask 130048   ;;  %s497_s0 = smov 124  }
  0x10   :  { %413 = vmatprep.subr.bf16.mxu1 %v495_v0  ;;  %415 = vmatprep.mubr.msk.bf16.mxu1 %vm496_vm0, %v495_v0  ;;  %42 = vst.msk [vmem:[#allocation2] sm:$0xf] %vm41_vm1, %v39_v1  ;;  %43 = vst.msk [vmem:[#allocation2 + $0x4] sm:$0xf] %vm41_vm1, %v40_v2  ;;  %v378_v3 = vcombine.low %v39_v1, %v40_v2  ;;  %v447_v14 = vld [vmem:[#allocation3] sm:$0x3f]   ;;  %v44_v16 = vunpack.c.l.bf16 %v39_v1  ;;  %v45_v21 = vunpack.c.l.bf16 %v40_v2 }
  0x11   :  { %vm229_vm3 = vcmask 1045504   ;;  %s498_s1 = smov 8   ;;  %vm208_vm4 = vcmask 31744   ;;  %vm212_vm5 = vcmask 64512   ;;  %vm226_vm6 = vcmask 97280   ;;  %s499_s29 = smov [#allocation6]  }
  0x12   :  { %408 = vmatpush3.bf16.msra.mxu0 %v378_v3  ;;  %v231_v15 = vsel %vm229_vm3, %v447_v14, 0  ;;  %v388_v40 = vld [vmem:[%s562_s3] ss:$0 sm:$0xff]  ;;  %s357_s30 = sshll.u32 %s499_s29, 4  ;;  %s358_s30 = int_to_ptr.vmem [resolvable:$true] %s357_s30 }
  0x13   :  { %419 = vmatprep.subr.bf16.mxu0 %v495_v0  ;;  %s468_s3 = scalar_lea.vmem %s358_s30, 512  ;;  %p473_p6 = scmp.lt.s32.totalorder %s358_s30, %s358_s30 }
  0x14   :  { %p469_p5 = scmp.ne.s32.totalorder %s358_s30, %s468_s3  ;;  %p474_p7 = scmp.lt.s32.totalorder %s468_s3, %s468_s3 }
  0x15   :  { %410 = vmatmul.mubr.msk.bf16.vlgmr.msra.gmra.mxu0 %vm57_vm2, %v440_v4 }
  0x16   :  { %421 = vmatprep.mubr.msk.bf16.mxu0 %vm496_vm0, %v495_v0  ;;  %420 = vmatpush3.bf16.msra.mxu0 %v231_v15  ;;  %p475_p8 = por %p474_p7, %p473_p6 }
  0x17   :  { %v442_v13 = vld [vmem:[#allocation2] sm:$0xff]  }
  0x18   :  { %v443_v31 = vld [vmem:[#allocation2] sm:$0xff]   ;;  %p476_p9 = pnand %p475_p8, %p469_p5 }
  0xd5   :  { %v95_v5 = vpop.f32.mrf.mxu0 }
  0xd6   :  { %v395_v6 = vpack.c.bf16 %v95_v5, %v95_v5 }
  0xd7   :  { %v411_v7 = vpop.f32.mrf.mxu0 }
  0xd8   :  { %111 = vst.msk [vmem:[#allocation2 + $0x8] sm:$0xf] %vm41_vm1, %v395_v6 }
  0xd9   :  { %v98_v8 = vpop.f32.mrf.mxu0 }
  0xda   :  { %v396_v9 = vpack.c.bf16 %v98_v8, %v98_v8  ;;  %v102_v10 = vpack.c.bf16 %v98_v8, %v95_v5 }
  0xdb   :  { %v412_v11 = vpop.f32.mrf.mxu0 }
  0xdc   :  { %112 = vst.msk [vmem:[#allocation2 + $0xc] sm:$0xf] %vm41_vm1, %v396_v9  ;;  %414 = vmatpush3.bf16.msra.mxu1 %v102_v10 }
  0xdd   :  { %425 = vmatprep.subr.bf16.mxu1 %v495_v0 }
  0xdf   :  { %416 = vmatmul.mubr.msk.bf16.vlgmr.msra.gmra.mxu1 %vm57_vm2, %v440_v4 }
  0xe0   :  { %427 = vmatprep.mubr.msk.bf16.mxu1 %vm496_vm0, %v495_v0  ;;  %426 = vmatpush3.bf16.msra.mxu1 %v231_v15 }
  0xe3   :  { %v441_v12 = vld [vmem:[#allocation2 + $0x8] sm:$0xff]  }
  0xe4   :  { %199 = vrot.lane.b32.xlu0 %v441_v12, %s494_s19  ;;  %v444_v36 = vld [vmem:[#allocation2 + $0x8] sm:$0xff]  }
  0xe8   :  { %287 = vrot.lane.b32.xlu0 %v442_v13, %s497_s0 }
 0x156   :  { %v200_v30 = vpop.permute.xlu0 %199 }
 0x157   :  { %v211_v32 = vsel %vm208_vm4, %v443_v31, %v200_v30 }
 0x15a   :  { %v288_v34 = vpop.permute.xlu0 %287 }
 0x15b   :  { %v303_v37 = vsel %vm208_vm4, %v288_v34, %v444_v36 }
 0x19f   :  { %v147_v17 = vpop.f32.mrf.mxu1 }
 0x1a0   :  { %v154_v18 = vmul.f32 2.0, %v147_v17 }
 0x1a1   :  { %v417_v19 = vpop.f32.mrf.mxu1 }
 0x1a2   :  { %v156_v20 = vsub.f32 %v154_v18, %v44_v16 }
 0x1a3   :  { %v150_v22 = vpop.f32.mrf.mxu1 }
 0x1a4   :  { %v397_v23 = vpack.c.bf16 %v156_v20, %v156_v20  ;;  %v155_v24 = vmul.f32 2.0, %v150_v22 }
 0x1a5   :  { %v418_v25 = vpop.f32.mrf.mxu1 }
 0x1a6   :  { %167 = vst.msk [vmem:[#allocation2 + $0x10] sm:$0xf] %vm41_vm1, %v397_v23  ;;  %v157_v26 = vsub.f32 %v155_v24, %v45_v21 }
 0x1a8   :  { %v398_v27 = vpack.c.bf16 %v157_v26, %v157_v26 }
 0x1aa   :  { %168 = vst.msk [vmem:[#allocation2 + $0x14] sm:$0xf] %vm41_vm1, %v398_v27 }
 0x1b1   :  { %v445_v28 = vld [vmem:[#allocation2 + $0x10] sm:$0xff]  }
 0x1b2   :  { %206 = vrot.lane.b32.xlu1 %v445_v28, %s498_s1  ;;  %v446_v29 = vld [vmem:[#allocation2 + $0x10] sm:$0xff]  }
 0x1b6   :  { %299 = vrot.lane.b32.xlu1 %v446_v29, %s494_s19 }
 0x224   :  { %v207_v33 = vpop.permute.xlu1 %206 }
 0x225   :  { %v214_v35 = vsel %vm212_vm5, %v211_v32, %v207_v33 }
 0x226   :  { %422 = vmatmul.mubr.msk.bf16.vlgmr.msra.gmra.mxu0 %vm226_vm6, %v214_v35 }
 0x228   :  { %v300_v38 = vpop.permute.xlu1 %299 }
 0x229   :  { %v305_v39 = vsel %vm212_vm5, %v303_v37, %v300_v38 }
 0x22a   :  { %428 = vmatmul.mubr.msk.bf16.vlgmr.msra.gmra.mxu1 %vm226_vm6, %v305_v39 }
 0x2e6   :  { %v267_v41 = vpop.f32.mrf.mxu0 }
 0x2e7   :  { %v268_v42 = vadd.f32 %v388_v40, %v267_v41 }
 0x2e8   :  { %v423_v43 = vpop.f32.mrf.mxu0 }
 0x2e9   :  { %274 = vst [vmem:[#allocation6] sm:$0xff] %v268_v42 }
 0x2ea   :  { %v270_v44 = vpop.f32.mrf.mxu0  ;;  %v342_v45 = vpop.f32.mrf.mxu1 }
 0x2eb   :  { %v271_v46 = vadd.f32 %v388_v40, %v270_v44  ;;  %v343_v47 = vadd.f32 %v388_v40, %v342_v45 }
 0x2ec   :  { %v424_v48 = vpop.f32.mrf.mxu0  ;;  %v429_v49 = vpop.f32.mrf.mxu1 }
 0x2ed   :  { %275 = vst [vmem:[#allocation6 + $0x8] sm:$0xff] %v271_v46  ;;  %350 = vst [vmem:[#allocation6 + $0x10] sm:$0xff] %v343_v47 }
 0x2ee   :  { %v345_v50 = vpop.f32.mrf.mxu1 }
 0x2ef   :  { %v346_v51 = vadd.f32 %v388_v40, %v345_v50 }
 0x2f0   :  { %v430_v52 = vpop.f32.mrf.mxu1 }
 0x2f1   :  { %351 = vst [vmem:[#allocation6 + $0x18] sm:$0xff] %v346_v51 }
 0x2f2   :  { %479 = shalt.err (!%p476_p9)
}
 0x2f3   :  { %s500_s5 = smov 128  }
 0x2f4   :  { %363 = dma.vmem_to_hbm [thread:$0]  %s358_s30, 512, %s563_s4, [#allocation5], %s500_s5, %s500_s5, %s498_s1  }
 0x2f5   :  { %490 = dma.done.wait [#allocation5], 512  }
 0x2f6   :  { %491 = vsyncadd [#allocation5], 4294966784 }
 0x2f7   :  { %367 = vsyncpa [#allocation4], 1 }
 0x2f8   :  { %368 = vsyncpa [#allocation5], 1 }

// kernel: tpu_custom_call.1
= control target key start
LH: loop header
LB: loop body
LE: loop exit
PB: predicated region body
PF: predicated region fallthrough
CT: control target
= control target key end

     0   :  { %9 = vsyncpa [#allocation4], 0  ;;  %s559_s0 = inlined_call_operand.vmem [shape: bf16[16,16], index: 0, kind: input, shape index: {}]   ;;  %s560_s1 = inlined_call_operand.vmem [shape: bf16[16,8], index: 1, kind: input, shape index: {}]   ;;  %s561_s2 = inlined_call_operand.hbm [shape: bf16[12,128], index: 2, kind: input, shape index: {}]   ;;  %s562_s3 = inlined_call_operand.vmem [shape: f32[1,128], index: 3, kind: input, shape index: {}]   ;;  %s563_s4 = inlined_call_operand.hbm [shape: f32[2,16,128], index: 4, kind: output, shape index: {}]  }
   0x1   :  { %10 = vsyncpa [#allocation5], 0  ;;  %s492_s15 = smov [#allocation3]  }
   0x2   :  { %s20_s16 = sshll.u32 %s492_s15, 4  ;;  %s21_s16 = int_to_ptr.vmem [resolvable:$true] %s20_s16 }
   0x3   :  { %s456_s17 = scalar_lea.vmem %s21_s16, 128  ;;  %p461_p1 = scmp.lt.s32.totalorder %s21_s16, %s21_s16 }
   0x4   :  { %p457_p0 = scmp.ne.s32.totalorder %s21_s16, %s456_s17  ;;  %p462_p2 = scmp.lt.s32.totalorder %s456_s17, %s456_s17 }
   0x6   :  { %p463_p3 = por %p462_p2, %p461_p1 }
   0x8   :  { %p464_p4 = pnand %p463_p3, %p457_p0 }
   0xa   :  { %467 = shalt.err (!%p464_p4)
}
   0xb   :  { %s493_s18 = smov 64   ;;  %s494_s19 = smov 4  }
   0xc   :  { %26 = dma.hbm_to_vmem [thread:$0]  %s561_s2, 128, %s21_s16, [#allocation4], %s493_s18, %s493_s18, %s494_s19  }
   0xd   :  { %488 = dma.done.wait [#allocation4], 128  }
   0xe   :  { %489 = vsyncadd [#allocation4], 4294967168  ;;  %v495_v0 = vmov 0.0   ;;  %vm496_vm0 = vmmov 0   ;;  %vm41_vm1 = vcmask 60416   ;;  %v440_v4 = vld [vmem:[%s559_s0] sm:$0xff]  }
   0xf   :  { %407 = vmatprep.subr.bf16.mxu0 %v495_v0  ;;  %409 = vmatprep.mubr.msk.bf16.mxu0 %vm496_vm0, %v495_v0  ;;  %v39_v1 = vld [vmem:[%s560_s1] sm:$0xf]  ;;  %v40_v2 = vld [vmem:[%s560_s1 + $0x4] sm:$0xf]  ;;  %vm57_vm2 = vcmask 130048   ;;  %s497_s0 = smov 124  }
  0x10   :  { %413 = vmatprep.subr.bf16.mxu1 %v495_v0  ;;  %415 = vmatprep.mubr.msk.bf16.mxu1 %vm496_vm0, %v495_v0  ;;  %42 = vst.msk [vmem:[#allocation2] sm:$0xf] %vm41_vm1, %v39_v1  ;;  %43 = vst.msk [vmem:[#allocation2 + $0x4] sm:$0xf] %vm41_vm1, %v40_v2  ;;  %v378_v3 = vcombine.low %v39_v1, %v40_v2  ;;  %v447_v14 = vld [vmem:[#allocation3] sm:$0x3f]   ;;  %v44_v16 = vunpack.c.l.bf16 %v39_v1  ;;  %v45_v21 = vunpack.c.l.bf16 %v40_v2 }
  0x11   :  { %vm229_vm3 = vcmask 1045504   ;;  %s498_s1 = smov 8   ;;  %vm208_vm4 = vcmask 31744   ;;  %vm212_vm5 = vcmask 64512   ;;  %vm226_vm6 = vcmask 97280   ;;  %s499_s29 = smov [#allocation6]  }
  0x12   :  { %408 = vmatpush3.bf16.msra.mxu0 %v378_v3  ;;  %v231_v15 = vsel %vm229_vm3, %v447_v14, 0  ;;  %v388_v40 = vld [vmem:[%s562_s3] ss:$0 sm:$0xff]  ;;  %s357_s30 = sshll.u32 %s499_s29, 4  ;;  %s358_s30 = int_to_ptr.vmem [resolvable:$true] %s357_s30 }
  0x13   :  { %419 = vmatprep.subr.bf16.mxu0 %v495_v0  ;;  %s468_s3 = scalar_lea.vmem %s358_s30, 512  ;;  %p473_p6 = scmp.lt.s32.totalorder %s358_s30, %s358_s30 }
  0x14   :  { %p469_p5 = scmp.ne.s32.totalorder %s358_s30, %s468_s3  ;;  %p474_p7 = scmp.lt.s32.totalorder %s468_s3, %s468_s3 }
  0x15   :  { %410 = vmatmul.mubr.msk.bf16.vlgmr.msra.gmra.mxu0 %vm57_vm2, %v440_v4 }
  0x16   :  { %421 = vmatprep.mubr.msk.bf16.mxu0 %vm496_vm0, %v495_v0  ;;  %420 = vmatpush3.bf16.msra.mxu0 %v231_v15  ;;  %p475_p8 = por %p474_p7, %p473_p6 }
  0x17   :  { %v442_v13 = vld [vmem:[#allocation2] sm:$0xff]  }
  0x18   :  { %v443_v31 = vld [vmem:[#allocation2] sm:$0xff]   ;;  %p476_p9 = pnand %p475_p8, %p469_p5 }
  0xd5   :  { %v95_v5 = vpop.f32.mrf.mxu0 }
  0xd6   :  { %v395_v6 = vpack.c.bf16 %v95_v5, %v95_v5 }
  0xd7   :  { %v411_v7 = vpop.f32.mrf.mxu0 }
  0xd8   :  { %111 = vst.msk [vmem:[#allocation2 + $0x8] sm:$0xf] %vm41_vm1, %v395_v6 }
  0xd9   :  { %v98_v8 = vpop.f32.mrf.mxu0 }
  0xda   :  { %v396_v9 = vpack.c.bf16 %v98_v8, %v98_v8  ;;  %v102_v10 = vpack.c.bf16 %v98_v8, %v95_v5 }
  0xdb   :  { %v412_v11 = vpop.f32.mrf.mxu0 }
  0xdc   :  { %112 = vst.msk [vmem:[#allocation2 + $0xc] sm:$0xf] %vm41_vm1, %v396_v9  ;;  %414 = vmatpush3.bf16.msra.mxu1 %v102_v10 }
  0xdd   :  { %425 = vmatprep.subr.bf16.mxu1 %v495_v0 }
  0xdf   :  { %416 = vmatmul.mubr.msk.bf16.vlgmr.msra.gmra.mxu1 %vm57_vm2, %v440_v4 }
  0xe0   :  { %427 = vmatprep.mubr.msk.bf16.mxu1 %vm496_vm0, %v495_v0  ;;  %426 = vmatpush3.bf16.msra.mxu1 %v231_v15 }
  0xe3   :  { %v441_v12 = vld [vmem:[#allocation2 + $0x8] sm:$0xff]  }
  0xe4   :  { %199 = vrot.lane.b32.xlu0 %v441_v12, %s494_s19  ;;  %v444_v36 = vld [vmem:[#allocation2 + $0x8] sm:$0xff]  }
  0xe8   :  { %287 = vrot.lane.b32.xlu0 %v442_v13, %s497_s0 }
 0x156   :  { %v200_v30 = vpop.permute.xlu0 %199 }
 0x157   :  { %v211_v32 = vsel %vm208_vm4, %v443_v31, %v200_v30 }
 0x15a   :  { %v288_v34 = vpop.permute.xlu0 %287 }
 0x15b   :  { %v303_v37 = vsel %vm208_vm4, %v288_v34, %v444_v36 }
 0x19f   :  { %v147_v17 = vpop.f32.mrf.mxu1 }
 0x1a0   :  { %v154_v18 = vmul.f32 2.0, %v147_v17 }
 0x1a1   :  { %v417_v19 = vpop.f32.mrf.mxu1 }
 0x1a2   :  { %v156_v20 = vsub.f32 %v154_v18, %v44_v16 }
 0x1a3   :  { %v150_v22 = vpop.f32.mrf.mxu1 }
 0x1a4   :  { %v397_v23 = vpack.c.bf16 %v156_v20, %v156_v20  ;;  %v155_v24 = vmul.f32 2.0, %v150_v22 }
 0x1a5   :  { %v418_v25 = vpop.f32.mrf.mxu1 }
 0x1a6   :  { %167 = vst.msk [vmem:[#allocation2 + $0x10] sm:$0xf] %vm41_vm1, %v397_v23  ;;  %v157_v26 = vsub.f32 %v155_v24, %v45_v21 }
 0x1a8   :  { %v398_v27 = vpack.c.bf16 %v157_v26, %v157_v26 }
 0x1aa   :  { %168 = vst.msk [vmem:[#allocation2 + $0x14] sm:$0xf] %vm41_vm1, %v398_v27 }
 0x1b1   :  { %v445_v28 = vld [vmem:[#allocation2 + $0x10] sm:$0xff]  }
 0x1b2   :  { %206 = vrot.lane.b32.xlu1 %v445_v28, %s498_s1  ;;  %v446_v29 = vld [vmem:[#allocation2 + $0x10] sm:$0xff]  }
 0x1b6   :  { %299 = vrot.lane.b32.xlu1 %v446_v29, %s494_s19 }
 0x224   :  { %v207_v33 = vpop.permute.xlu1 %206 }
 0x225   :  { %v214_v35 = vsel %vm212_vm5, %v211_v32, %v207_v33 }
 0x226   :  { %422 = vmatmul.mubr.msk.bf16.vlgmr.msra.gmra.mxu0 %vm226_vm6, %v214_v35 }
 0x228   :  { %v300_v38 = vpop.permute.xlu1 %299 }
 0x229   :  { %v305_v39 = vsel %vm212_vm5, %v303_v37, %v300_v38 }
 0x22a   :  { %428 = vmatmul.mubr.msk.bf16.vlgmr.msra.gmra.mxu1 %vm226_vm6, %v305_v39 }
 0x2e6   :  { %v267_v41 = vpop.f32.mrf.mxu0 }
 0x2e7   :  { %v268_v42 = vadd.f32 %v388_v40, %v267_v41 }
 0x2e8   :  { %v423_v43 = vpop.f32.mrf.mxu0 }
 0x2e9   :  { %274 = vst [vmem:[#allocation6] sm:$0xff] %v268_v42 }
 0x2ea   :  { %v270_v44 = vpop.f32.mrf.mxu0  ;;  %v342_v45 = vpop.f32.mrf.mxu1 }
 0x2eb   :  { %v271_v46 = vadd.f32 %v388_v40, %v270_v44  ;;  %v343_v47 = vadd.f32 %v388_v40, %v342_v45 }
 0x2ec   :  { %v424_v48 = vpop.f32.mrf.mxu0  ;;  %v429_v49 = vpop.f32.mrf.mxu1 }
 0x2ed   :  { %275 = vst [vmem:[#allocation6 + $0x8] sm:$0xff] %v271_v46  ;;  %350 = vst [vmem:[#allocation6 + $0x10] sm:$0xff] %v343_v47 }
 0x2ee   :  { %v345_v50 = vpop.f32.mrf.mxu1 }
 0x2ef   :  { %v346_v51 = vadd.f32 %v388_v40, %v345_v50 }
 0x2f0   :  { %v430_v52 = vpop.f32.mrf.mxu1 }
 0x2f1   :  { %351 = vst [vmem:[#allocation6 + $0x18] sm:$0xff] %v346_v51 }
 0x2f2   :  { %479 = shalt.err (!%p476_p9)
}
 0x2f3   :  { %s500_s5 = smov 128  }
 0x2f4   :  { %363 = dma.vmem_to_hbm [thread:$0]  %s358_s30, 512, %s563_s4, [#allocation5], %s500_s5, %s500_s5, %s498_s1  }
 0x2f5   :  { %490 = dma.done.wait [#allocation5], 512  }
 0x2f6   :  { %491 = vsyncadd [#allocation5], 4294966784 }
 0x2f7   :  { %367 = vsyncpa [#allocation4], 1 }
 0x2f8   :  { %368 = vsyncpa [#allocation5], 1 }

</bundles_post_ra>
